<compile_context>
chip_gen: v6e
topology: v6e:2x2x1
jax: 0.10.0
libtpu: 0.0.40
codegen_flags: <defaults>
</compile_context>

<pallas_src>
import functools

import jax
import jax.numpy as jnp
from jax.experimental import pallas as pl
from jax.experimental.pallas import tpu as pltpu


# ----------------------------- in-kernel helpers -----------------------------

def _squeeze_mlp(mean, w1t_ref, b1_ref, w2_ref, b2_ref):
    """Per-batch SE MLP on the VPU.  mean: (nb, C, 1) f32 -> scale (nb, C, 1) f32.

    A 1xC @ CxHid matmul would fill <0.1% of the MXU, so broadcast-multiply plus
    tiny cross-sublane / cross-lane reduces are used instead.
    """
    w1t = w1t_ref[...][None]                                   # (1, C, Hid)
    b1 = b1_ref[...][None]                                     # (1, 1, Hid)
    w2 = w2_ref[...][None]                                     # (1, C, Hid)
    b2 = b2_ref[...][None]                                     # (1, C, 1)
    h = jnp.sum(w1t * mean, axis=1, keepdims=True) + b1        # (nb, 1, Hid)
    h = jnp.maximum(h, 0.0)
    y = jnp.sum(w2 * h, axis=-1, keepdims=True) + b2           # (nb, C, 1)
    return jax.nn.sigmoid(y)


def _load_masked_f32(x_ref, t, hw, thw, rem):
    """Load the tile; zero lanes past the valid range of a partial last tile."""
    x = x_ref[...]
    xf = x.astype(jnp.float32)
    if rem:
        lane = jax.lax.broadcasted_iota(jnp.int32, xf.shape, xf.ndim - 1)
        xf = jnp.where(lane < (hw - t * thw), xf, 0.0)
    return x, xf


# ------------------------- Path A: resident output ---------------------------

def _resident_kernel(x_ref, w1t_ref, b1_ref, w2_ref, b2_ref, o_ref, sum_ref,
                     *, hw, thw, num_t, rem):
    inv_hw = 1.0 / hw

    if num_t == 1:
        # Whole group slab in one tile: skip the staging round trip through o_ref
        # (one less full VMEM store+reload; matters most on v5e's single vst slot).
        xf = x_ref[...].astype(jnp.float32)
        mean = jnp.sum(xf, axis=-1, keepdims=True) * inv_hw
        y = _squeeze_mlp(mean, w1t_ref, b1_ref, w2_ref, b2_ref)
        o_ref[...] = (xf * y).astype(o_ref.dtype)
        return

    t = pl.program_id(1)

    @pl.when(t == 0)
    def _():
        sum_ref[...] = jnp.zeros_like(sum_ref)

    x, xf = _load_masked_f32(x_ref, t, hw, thw, rem)
    sum_ref[...] += jnp.sum(xf, axis=-1, keepdims=True)

    # Stage this tile of x into the resident output block (lane-dense store).
    start = pl.multiple_of(t * thw, 128)
    if rem:
        @pl.when(t < num_t - 1)
        def _():
            o_ref[:, :, pl.ds(start, thw)] = x

        @pl.when(t == num_t - 1)
        def _():
            o_ref[:, :, pl.ds((num_t - 1) * thw, rem)] = x[..., :rem]
    else:
        o_ref[:, :, pl.ds(start, thw)] = x

    @pl.when(t == num_t - 1)
    def _():
        y = _squeeze_mlp(sum_ref[...] * inv_hw, w1t_ref, b1_ref, w2_ref, b2_ref)
        n_full = num_t - 1 if rem else num_t

        def rescale(i, carry):
            s = pl.multiple_of(i * thw, 128)
            blk = o_ref[:, :, pl.ds(s, thw)]
            # multiply in f32 (single rounding for bf16), chunked so f32 temporaries
            # stay at tile size rather than slab size
            o_ref[:, :, pl.ds(s, thw)] = (blk.astype(jnp.float32) * y).astype(o_ref.dtype)
            return carry

        jax.lax.fori_loop(0, n_full, rescale, 0)
        if rem:
            s = n_full * thw
            blk = o_ref[:, :, pl.ds(s, rem)]
            o_ref[:, :, pl.ds(s, rem)] = (blk.astype(jnp.float32) * y).astype(o_ref.dtype)


# ------------------- Path B: two streamed passes (v7x fallback) --------------

def _scale_kernel(x_ref, w1t_ref, b1_ref, w2_ref, b2_ref, y_ref, sum_ref,
                  *, hw, thw, num_t, rem):
    t = pl.program_id(1)

    @pl.when(t == 0)
    def _():
        sum_ref[...] = jnp.zeros_like(sum_ref)

    _, xf = _load_masked_f32(x_ref, t, hw, thw, rem)
    sum_ref[...] += jnp.sum(xf, axis=-1, keepdims=True)

    @pl.when(t == num_t - 1)
    def _():
        y_ref[...] = _squeeze_mlp(sum_ref[...] * (1.0 / hw),
                                  w1t_ref, b1_ref, w2_ref, b2_ref)


def _apply_kernel(x_ref, y_ref, o_ref):
    # multiply in f32 so bf16 inputs are rounded exactly once
    o_ref[...] = (x_ref[...].astype(jnp.float32) * y_ref[...]).astype(o_ref.dtype)


# --------------------------------- planning ----------------------------------

def _vmem_capacity_bytes():
    try:
        cap = int(pltpu.get_tpu_info().vmem_capacity_bytes)
    except Exception:
        cap = 64 << 20          # conservative default (v7x per-TensorCore VMEM)
    return max(cap, 32 << 20)


def _choose_plan(N, C, HW, isz, usable, force_path=None, force_nb=None, force_thw=None):
    """Pick execution path, batch fold `nb`, and HW tile `thw` from the VMEM budget."""
    divisors = [d for d in range(1, N + 1) if N % d == 0]
    min_thw = HW if HW < 128 else 128
    target = 4 << 20                       # aim for multi-MiB HBM tiles per grid step

    def a_bytes(nb, thw, nbuf=2):          # resident-output path footprint
        thw = min(thw, HW)
        slab = nb * C * HW * isz            # resident output block, double-buffered
        tile = nb * C * thw * isz           # one streamed input tile
        tmp = 2 * nb * C * thw * 4          # f32 temporaries (finalize / one-shot)
        return 2 * slab + nbuf * tile + tmp + nb * C * 8

    def b_bytes(nb, thw):                   # two-phase path footprint (apply pass dominates)
        thw = min(thw, HW)
        tile = nb * C * thw * isz
        return 4 * tile + 2 * nb * C * thw * 4 + nb * C * 16

    def finish(path, nb, thw):
        thw = min(thw, HW)
        if HW < 128 or thw >= HW:
            thw = HW
        else:
            thw = max(128, (thw // 128) * 128)
        num_t = -(-HW // thw)               # cdiv
        if num_t == 1:
            thw = HW
        rem = (HW % thw) if num_t > 1 else 0
        groups = N // nb
        nbuf = 2
        # Deeper input buffering keeps the next group's DMAs streaming under the
        # long last-step rescale / slab-writeback burst.
        if path == "A" and groups > 1 and num_t > 1 and a_bytes(nb, thw, 3) <= usable:
            nbuf = 3
        return dict(path=path, nb=nb, thw=thw, num_t=num_t, rem=rem,
                    nbuf=nbuf, groups=groups)

    if force_path is not None:
        return finish(force_path, force_nb or 1, force_thw or HW)

    if a_bytes(1, min_thw) <= usable:
        # ---- Path A: 1 HBM read + 1 HBM write of x ----
        nb1 = max((d for d in divisors if a_bytes(d, HW) <= usable), default=0)
        if nb1 and (nb1 * C * HW * isz >= target or nb1 == N):
            return finish("A", nb1, HW)      # single-tile groups, batches folded
        nb = max(d for d in divisors if a_bytes(d, min_thw) <= usable)
        spare = usable - 2 * nb * C * HW * isz - nb * C * 8
        max_thw = max(128, spare // (nb * C * (2 * isz + 8)))
        return finish("A", nb, min(max(target // (nb * C * isz), 128), max_thw))

    # ---- Path B: resident slab does not fit (e.g. large images on v7x) ----
    nb = max((d for d in divisors if b_bytes(d, min_thw) <= usable), default=1)
    max_thw = max(128, usable // (nb * C * (4 * isz + 8)))
    return finish("B", nb, min(max(target // (nb * C * isz), 128), max_thw))


def _x_spec(nb, C, thw, nbuf):
    index_map = lambda g, t: (g, 0, t)
    if nbuf > 2:
        try:
            return pl.BlockSpec((nb, C, thw), index_map, pipeline_mode=pl.Buffered(nbuf))
        except Exception:       # pipeline_mode / Buffered unavailable in this jax
            pass
    return pl.BlockSpec((nb, C, thw), index_map)


# --------------------------------- wrapper ------------------------------------

def local_pallas(x_nchw, w1, b1, w2, b2, *, force_path=None, force_nb=None, force_thw=None):
    """SAFMN `Local` forward.

    x_nchw: (N, C, H, W).  w1: (Hid, C) = conv1.weight[:, :, 0, 0];  b1: (Hid,);
    w2: (C, Hid) = conv2.weight[:, :, 0, 0];  b2: (C,).
    """
    N, C, H, W = x_nchw.shape
    HW = H * W
    Hid = w1.shape[0]
    isz = jnp.dtype(x_nchw.dtype).itemsize

    # Free layout change: NCHW -> (N, C, H*W); channels on sublanes, HW on lanes.
    x = x_nchw.reshape(N, C, HW)

    # Tiny MLP parameters in f32 so the scale is computed at full precision.
    w1t = jnp.transpose(w1).astype(jnp.float32)        # (C, Hid)
    b1r = b1.reshape(1, Hid).astype(jnp.float32)       # (1, Hid)
    w2f = w2.astype(jnp.float32)                       # (C, Hid)
    b2c = b2.reshape(C, 1).astype(jnp.float32)         # (C, 1)

    # Generation-aware VMEM budget (v5e/v6e: 128 MiB, v7x: 64 MiB per TensorCore).
    cap = _vmem_capacity_bytes()
    param_bytes = 2 * 4 * (2 * C * Hid + Hid + C)
    usable = int(0.80 * cap) - param_bytes - (2 << 20)

    plan = _choose_plan(N, C, HW, isz, usable,
                        force_path=force_path, force_nb=force_nb, force_thw=force_thw)
    nb, thw, num_t = plan["nb"], plan["thw"], plan["num_t"]
    rem, nbuf, groups = plan["rem"], plan["nbuf"], plan["groups"]

    def vmem_limit(need):
        return int(min(max(need + param_bytes + (6 << 20), 32 << 20), 0.88 * cap))

    param_specs = [
        pl.BlockSpec((C, Hid), lambda g, t: (0, 0)),
        pl.BlockSpec((1, Hid), lambda g, t: (0, 0)),
        pl.BlockSpec((C, Hid), lambda g, t: (0, 0)),
        pl.BlockSpec((C, 1), lambda g, t: (0, 0)),
    ]

    if plan["path"] == "A":
        kernel = functools.partial(_resident_kernel, hw=HW, thw=thw, num_t=num_t, rem=rem)
        need = (2 * nb * C * HW * isz + nbuf * nb * C * thw * isz
                + 2 * nb * C * thw * 4 + nb * C * 8)
        out = pl.pallas_call(
            kernel,
            out_shape=jax.ShapeDtypeStruct((N, C, HW), x.dtype),
            grid_spec=pltpu.PrefetchScalarGridSpec(
                num_scalar_prefetch=0,
                grid=(groups, num_t),
                in_specs=[_x_spec(nb, C, thw, nbuf)] + param_specs,
                out_specs=pl.BlockSpec((nb, C, HW), lambda g, t: (g, 0, 0)),
                scratch_shapes=[pltpu.VMEM((nb, C, 1), jnp.float32)],
            ),
            compiler_params=pltpu.CompilerParams(
                dimension_semantics=("parallel", "arbitrary"),
                vmem_limit_bytes=vmem_limit(need),
            ),
        )(x, w1t, b1r, w2f, b2c)
    else:
        # -------- pass 1: per-(n, c) sigmoid scale --------
        scale_kernel = functools.partial(_scale_kernel, hw=HW, thw=thw, num_t=num_t, rem=rem)
        need1 = 2 * nb * C * thw * isz + 2 * nb * C * thw * 4 + nb * C * 16
        y = pl.pallas_call(
            scale_kernel,
            out_shape=jax.ShapeDtypeStruct((N, C, 1), jnp.float32),
            grid_spec=pltpu.PrefetchScalarGridSpec(
                num_scalar_prefetch=0,
                grid=(groups, num_t),
                in_specs=[pl.BlockSpec((nb, C, thw), lambda g, t: (g, 0, t))] + param_specs,
                out_specs=pl.BlockSpec((nb, C, 1), lambda g, t: (g, 0, 0)),
                scratch_shapes=[pltpu.VMEM((nb, C, 1), jnp.float32)],
            ),
            compiler_params=pltpu.CompilerParams(
                dimension_semantics=("parallel", "arbitrary"),
                vmem_limit_bytes=vmem_limit(need1),
            ),
        )(x, w1t, b1r, w2f, b2c)

        # -------- pass 2: out = x * y, streamed with tiled lane-dense outputs --------
        need2 = 4 * nb * C * thw * isz + 2 * nb * C * thw * 4 + nb * C * 8
        out = pl.pallas_call(
            _apply_kernel,
            out_shape=jax.ShapeDtypeStruct((N, C, HW), x.dtype),
            grid_spec=pltpu.PrefetchScalarGridSpec(
                num_scalar_prefetch=0,
                grid=(groups, num_t),
                in_specs=[pl.BlockSpec((nb, C, thw), lambda g, t: (g, 0, t)),
                          pl.BlockSpec((nb, C, 1), lambda g, t: (g, 0, 0))],
                out_specs=pl.BlockSpec((nb, C, thw), lambda g, t: (g, 0, t)),
                scratch_shapes=[],
            ),
            compiler_params=pltpu.CompilerParams(
                dimension_semantics=("parallel", "parallel"),
                vmem_limit_bytes=vmem_limit(need2),
            ),
        )(x, y)

    return out.reshape(N, C, H, W)          # free reshape back to NCHW


def local_reference(x_nchw, w1, b1, w2, b2):
    """Pure-JAX reference matching the PyTorch forward exactly (NCHW)."""
    y = jnp.mean(x_nchw, axis=(2, 3), keepdims=True)                      # (N,C,1,1)
    y = jnp.einsum('nchw,oc->nohw', y, w1) + b1[None, :, None, None]      # conv1x1
    y = jax.nn.relu(y)
    y = jnp.einsum('nchw,oc->nohw', y, w2) + b2[None, :, None, None]      # conv1x1
    y = jax.nn.sigmoid(y)
    return x_nchw * y


if __name__ == "__main__":
    # Module config: dim=8, growth_rate=2.0 -> hidden_dim=4
    N, C, H, W = 2, 8, 16, 16
    Hid = C // 2

    key = jax.random.PRNGKey(0)
    kx, k1, k2, k3, k4 = jax.random.split(key, 5)

    x = jax.random.normal(kx, (N, C, H, W), dtype=jnp.float32)
    w1 = jax.random.normal(k1, (Hid, C), dtype=jnp.float32) * 0.1   # Conv2d(dim, hidden, 1)
    b1 = jax.random.normal(k2, (Hid,), dtype=jnp.float32) * 0.1
    w2 = jax.random.normal(k3, (C, Hid), dtype=jnp.float32) * 0.1   # Conv2d(hidden, dim, 1)
    b2 = jax.random.normal(k4, (C,), dtype=jnp.float32) * 0.1

    ref = local_reference(x, w1, b1, w2, b2)

    # default plan: small image -> one-shot resident path, batches folded (nb=N)
    out = jax.block_until_ready(local_pallas(x, w1, b1, w2, b2))
    assert out.shape == x.shape and out.dtype == x.dtype
    assert jnp.allclose(out, ref, atol=1e-5, rtol=1e-5), "default f32 mismatch"

    # forced tiled resident path (nb=1, thw=128; 2 groups -> 3-deep input buffering)
    out_a = jax.block_until_ready(
        local_pallas(x, w1, b1, w2, b2, force_path="A", force_nb=1, force_thw=128))
    assert jnp.allclose(out_a, ref, atol=1e-5, rtol=1e-5), "tiled resident mismatch"

    # forced two-phase streaming path (v7x large-image fallback)
    out_b = jax.block_until_ready(
        local_pallas(x, w1, b1, w2, b2, force_path="B", force_nb=1, force_thw=128))
    assert jnp.allclose(out_b, ref, atol=1e-5, rtol=1e-5), "two-phase mismatch"

    # non-128-divisible spatial size exercising the masked partial last tile
    x_odd = jax.random.normal(kx, (N, C, 20, 20), dtype=jnp.float32)
    ref_odd = local_reference(x_odd, w1, b1, w2, b2)
    out_oa = jax.block_until_ready(
        local_pallas(x_odd, w1, b1, w2, b2, force_path="A", force_nb=1, force_thw=128))
    assert jnp.allclose(out_oa, ref_odd, atol=1e-5, rtol=1e-5), "odd-size resident mismatch"
    out_ob = jax.block_until_ready(
        local_pallas(x_odd, w1, b1, w2, b2, force_path="B", force_nb=1, force_thw=128))
    assert jnp.allclose(out_ob, ref_odd, atol=1e-5, rtol=1e-5), "odd-size two-phase mismatch"

    # bf16 fast path: scale computed and applied in f32, single rounding to bf16
    xb = x.astype(jnp.bfloat16)
    ref_bf = local_reference(xb.astype(jnp.float32), w1, b1, w2, b2)
    out_bf = jax.block_until_ready(local_pallas(xb, w1, b1, w2, b2))
    assert out_bf.shape == x.shape and out_bf.dtype == jnp.bfloat16
    assert jnp.allclose(out_bf.astype(jnp.float32), ref_bf, atol=2e-2, rtol=2e-2), "bf16 mismatch"

    print("KERNEL_OK")
</pallas_src>

<mosaic_0001>
module attributes {stable_mosaic.version = 11 : i64} {
  func.func @_resident_kernel(%arg0: i32, %arg1: i32, %arg2: memref<2x8x256xf32, #tpu.memory_space<vmem>>, %arg3: memref<8x4xf32, #tpu.memory_space<vmem>>, %arg4: memref<1x4xf32, #tpu.memory_space<vmem>>, %arg5: memref<8x4xf32, #tpu.memory_space<vmem>>, %arg6: memref<8x1xf32, #tpu.memory_space<vmem>>, %arg7: memref<2x8x256xf32, #tpu.memory_space<vmem>>, %arg8: memref<2x8x1xf32, #tpu.memory_space<vmem>>) attributes {dimension_semantics = [#tpu.dimension_semantics<parallel>, #tpu.dimension_semantics<arbitrary>], iteration_bounds = array<i64: 1, 1>, scalar_prefetch = 0 : i64, scratch_operands = 1 : i64, tpu.core_type = #tpu.core_type<tc>, window_params = [{transform_indices = @transform_0, window_bounds = array<i64: 2, 8, 256>}, {pipeline_mode = #tpu.pipeline_mode<synchronous>, transform_indices = @transform_1, window_bounds = array<i64: 8, 4>}, {pipeline_mode = #tpu.pipeline_mode<synchronous>, transform_indices = @transform_2, window_bounds = array<i64: 1, 4>}, {pipeline_mode = #tpu.pipeline_mode<synchronous>, transform_indices = @transform_3, window_bounds = array<i64: 8, 4>}, {pipeline_mode = #tpu.pipeline_mode<synchronous>, transform_indices = @transform_4, window_bounds = array<i64: 8, 1>}, {transform_indices = @transform_5, window_bounds = array<i64: 2, 8, 256>}]} {
    %c0 = arith.constant 0 : index
    %c0_0 = arith.constant 0 : index
    %c0_1 = arith.constant 0 : index
    %0 = vector.load %arg2[%c0, %c0_0, %c0_1] : memref<2x8x256xf32, #tpu.memory_space<vmem>>, vector<2x8x256xf32>
    %cst = arith.constant dense<0.000000e+00> : vector<2x8xf32>
    %1 = vector.multi_reduction <add>, %0, %cst [2] : vector<2x8x256xf32> to vector<2x8xf32>
    %2 = vector.shape_cast %1 : vector<2x8xf32> to vector<2x8x1xf32>
    %cst_2 = arith.constant 3.906250e-03 : f32
    %3 = vector.broadcast %cst_2 : f32 to vector<2x8x1xf32>
    %4 = arith.mulf %2, %3 : vector<2x8x1xf32>
    %c0_3 = arith.constant 0 : index
    %c0_4 = arith.constant 0 : index
    %5 = vector.load %arg3[%c0_3, %c0_4] : memref<8x4xf32, #tpu.memory_space<vmem>>, vector<8x4xf32>
    %6 = vector.shape_cast %5 : vector<8x4xf32> to vector<1x8x4xf32>
    %c0_5 = arith.constant 0 : index
    %c0_6 = arith.constant 0 : index
    %7 = vector.load %arg4[%c0_5, %c0_6] : memref<1x4xf32, #tpu.memory_space<vmem>>, vector<1x4xf32>
    %8 = vector.shape_cast %7 : vector<1x4xf32> to vector<1x1x4xf32>
    %c0_7 = arith.constant 0 : index
    %c0_8 = arith.constant 0 : index
    %9 = vector.load %arg5[%c0_7, %c0_8] : memref<8x4xf32, #tpu.memory_space<vmem>>, vector<8x4xf32>
    %10 = vector.shape_cast %9 : vector<8x4xf32> to vector<1x8x4xf32>
    %c0_9 = arith.constant 0 : index
    %c0_10 = arith.constant 0 : index
    %11 = vector.load %arg6[%c0_9, %c0_10] : memref<8x1xf32, #tpu.memory_space<vmem>>, vector<8x1xf32>
    %12 = vector.shape_cast %11 : vector<8x1xf32> to vector<1x8x1xf32>
    %13 = vector.broadcast %6 : vector<1x8x4xf32> to vector<2x8x4xf32>
    %14 = vector.broadcast %4 : vector<2x8x1xf32> to vector<2x8x4xf32>
    %15 = arith.mulf %13, %14 : vector<2x8x4xf32>
    %cst_11 = arith.constant dense<0.000000e+00> : vector<2x4xf32>
    %16 = vector.multi_reduction <add>, %15, %cst_11 [1] : vector<2x8x4xf32> to vector<2x4xf32>
    %17 = vector.shape_cast %16 : vector<2x4xf32> to vector<2x1x4xf32>
    %18 = vector.broadcast %8 : vector<1x1x4xf32> to vector<2x1x4xf32>
    %19 = arith.addf %17, %18 : vector<2x1x4xf32>
    %cst_12 = arith.constant 0.000000e+00 : f32
    %20 = vector.broadcast %cst_12 : f32 to vector<2x1x4xf32>
    %21 = arith.maximumf %19, %20 : vector<2x1x4xf32>
    %22 = vector.broadcast %10 : vector<1x8x4xf32> to vector<2x8x4xf32>
    %23 = vector.broadcast %21 : vector<2x1x4xf32> to vector<2x8x4xf32>
    %24 = arith.mulf %22, %23 : vector<2x8x4xf32>
    %cst_13 = arith.constant dense<0.000000e+00> : vector<2x8xf32>
    %25 = vector.multi_reduction <add>, %24, %cst_13 [2] : vector<2x8x4xf32> to vector<2x8xf32>
    %26 = vector.shape_cast %25 : vector<2x8xf32> to vector<2x8x1xf32>
    %27 = vector.broadcast %12 : vector<1x8x1xf32> to vector<2x8x1xf32>
    %28 = arith.addf %26, %27 : vector<2x8x1xf32>
    %29 = arith.negf %28 : vector<2x8x1xf32>
    %30 = math.exp %29 : vector<2x8x1xf32>
    %cst_14 = arith.constant 1.000000e+00 : f32
    %31 = vector.broadcast %cst_14 : f32 to vector<2x8x1xf32>
    %32 = arith.addf %31, %30 : vector<2x8x1xf32>
    %33 = arith.divf %31, %32 : vector<2x8x1xf32>
    %34 = vector.broadcast %33 : vector<2x8x1xf32> to vector<2x8x256xf32>
    %35 = arith.mulf %0, %34 : vector<2x8x256xf32>
    %c0_15 = arith.constant 0 : index
    %c0_16 = arith.constant 0 : index
    %c0_17 = arith.constant 0 : index
    %36 = vector.load %arg7[%c0_15, %c0_16, %c0_17] : memref<2x8x256xf32, #tpu.memory_space<vmem>>, vector<2x8x256xf32>
    tpu.vector_store %arg7[%c0_15, %c0_16, %c0_17], %35 {strides = array<i32>} : memref<2x8x256xf32, #tpu.memory_space<vmem>>, vector<2x8x256xf32>,
    return
  }
  func.func @transform_0(%arg0: i32, %arg1: i32) -> (i32, i32, i32) {
    %c0_i32 = arith.constant 0 : i32
    %c0_i32_0 = arith.constant 0 : i32
    return %arg0, %c0_i32, %arg1 : i32, i32, i32
  }
  func.func @transform_1(%arg0: i32, %arg1: i32) -> (i32, i32) {
    %c0_i32 = arith.constant 0 : i32
    %c0_i32_0 = arith.constant 0 : i32
    %c0_i32_1 = arith.constant 0 : i32
    return %c0_i32, %c0_i32_0 : i32, i32
  }
  func.func @transform_2(%arg0: i32, %arg1: i32) -> (i32, i32) {
    %c0_i32 = arith.constant 0 : i32
    %c0_i32_0 = arith.constant 0 : i32
    %c0_i32_1 = arith.constant 0 : i32
    return %c0_i32, %c0_i32_0 : i32, i32
  }
  func.func @transform_3(%arg0: i32, %arg1: i32) -> (i32, i32) {
    %c0_i32 = arith.constant 0 : i32
    %c0_i32_0 = arith.constant 0 : i32
    %c0_i32_1 = arith.constant 0 : i32
    return %c0_i32, %c0_i32_0 : i32, i32
  }
  func.func @transform_4(%arg0: i32, %arg1: i32) -> (i32, i32) {
    %c0_i32 = arith.constant 0 : i32
    %c0_i32_0 = arith.constant 0 : i32
    %c0_i32_1 = arith.constant 0 : i32
    return %c0_i32, %c0_i32_0 : i32, i32
  }
  func.func @transform_5(%arg0: i32, %arg1: i32) -> (i32, i32, i32) {
    %c0_i32 = arith.constant 0 : i32
    %c0_i32_0 = arith.constant 0 : i32
    %c0_i32_1 = arith.constant 0 : i32
    return %arg0, %c0_i32, %c0_i32_0 : i32, i32, i32
  }
}

</mosaic_0001>

<bundles_post_ra>
// kernel: tpu_custom_call.1
= control target key start
LH: loop header
LB: loop body
LE: loop exit
PB: predicated region body
PF: predicated region fallthrough
CT: control target
= control target key end

     0   :  { %10 = vsyncpa [#allocation4], 0  ;;  %s278_s0 = inlined_call_operand.vmem [shape: f32[2,8,256], index: 0, kind: input, shape index: {}]   ;;  %s279_s1 = inlined_call_operand.vmem [shape: f32[8,4], index: 1, kind: input, shape index: {}]   ;;  %s280_s2 = inlined_call_operand.hbm [shape: f32[1,4], index: 2, kind: input, shape index: {}]   ;;  %s281_s3 = inlined_call_operand.vmem [shape: f32[8,4], index: 3, kind: input, shape index: {}]   ;;  %s282_s4 = inlined_call_operand.vmem [shape: f32[8,1], index: 4, kind: input, shape index: {}]   ;;  %s283_s5 = inlined_call_operand.hbm [shape: f32[2,8,256], index: 5, kind: output, shape index: {}]  }
   0x1   :  { %11 = vsyncpa [#allocation5], 0  ;;  %s196_s18 = smov [#allocation3]  }
   0x2   :  { %s22_s19 = sshll.u32 %s196_s18, 4  ;;  %s23_s19 = int_to_ptr.vmem [resolvable:$true] %s22_s19 }
   0x3   :  { %s160_s20 = scalar_lea.vmem %s23_s19, 16  ;;  %s164_s21 = scalar_lea.vmem %s23_s19, 32 }
   0x4   :  { %p161_p0 = scmp.ne.s32.totalorder %s23_s19, %s160_s20  ;;  %p165_p1 = scmp.lt.s32.totalorder %s23_s19, %s23_s19 }
   0x5   :  { %p166_p2 = scmp.lt.s32.totalorder %s164_s21, %s160_s20 }
   0x7   :  { %p167_p3 = por %p166_p2, %p165_p1 }
   0x9   :  { %p168_p4 = pnand %p167_p3, %p161_p0 }
   0xb   :  { %171 = shalt.err (!%p168_p4)
}
   0xc   :  { %25 = dma.hbm_to_vmem [thread:$0]  %s280_s2, 16, %s23_s19, [#allocation4]  }
   0xd   :  { %192 = dma.done.wait [#allocation4], 16  }
   0xe   :  { %193 = vsyncadd [#allocation4], 4294967280  ;;  %v237_v0 = vld [vmem:[%s278_s0] sm:$0xff]  ;;  %v242_v1 = vld [vmem:[%s278_s0 + $0x8] sm:$0xff]  ;;  %vm51_vm0 = vcmask 31744   ;;  %v70_v18 = vlaneseq  ;;  %v197_v42 = vmov 0  }
   0xf   :  { %v247_v2 = vld [vmem:[%s278_s0 + $0x10] sm:$0xff]  ;;  %v37_v3 = vadd.f32 %v242_v1, %v237_v0  ;;  %v254_v4 = vld [vmem:[%s278_s0 + $0x18] sm:$0xff]  ;;  %v45_v6 = vld [vmem:[%s279_s1] sm:$0xff]  ;;  %142 = vset.pattern.permute.xlu0 %v197_v42  ;;  %143 = vset.pattern.permute.xlu1 %v197_v42 }
  0x10   :  { %v40_v5 = vadd.f32 %v254_v4, %v247_v2  ;;  %v71_v23 = vshrl.u32 %v70_v18, 7  ;;  %v46_v25 = vld [vmem:[#allocation3] sm:$0x1] }
  0x11   :  { %38 = vadd.xlane.f32.xlu0 %v37_v3  ;;  %v47_v33 = vld [vmem:[%s281_s3] sm:$0xff]  ;;  %s198_s3 = smov [#allocation6]  }
  0x12   :  { %v72_v29 = vsub.s32 0, %v71_v23  ;;  %v48_v43 = vld [vmem:[%s282_s4] sm:$0xff]  ;;  %s123_s4 = sshll.u32 %s198_s3, 4  ;;  %s124_s4 = int_to_ptr.vmem [resolvable:$true] %s123_s4 }
  0x13   :  { %s172_s10 = scalar_lea.vmem %s124_s4, 512  ;;  %p177_p6 = scmp.lt.s32.totalorder %s124_s4, %s124_s4 }
  0x14   :  { %p173_p5 = scmp.ne.s32.totalorder %s124_s4, %s172_s10  ;;  %p178_p7 = scmp.lt.s32.totalorder %s172_s10, %s172_s10 }
  0x15   :  { %41 = vadd.xlane.f32.xlu0 %v40_v5 }
  0x16   :  { %p179_p8 = por %p178_p7, %p177_p6 }
  0x18   :  { %p180_p9 = pnand %p179_p8, %p173_p5 }
  0x9a   :  { %v39_v7 = vpop.xlane.xlu0 %38 }
  0x9b   :  { %v43_v8 = vmul.f32 0.00390625, %v39_v7 }
  0x9d   :  { %v49_v9 = vmul.f32 %v45_v6, %v43_v8 }
  0x9e   :  { %v42_v10 = vpop.xlane.xlu0 %41 }
  0x9f   :  { %v44_v11 = vmul.f32 0.00390625, %v42_v10  ;;  %v52_v12 = vsel %vm51_vm0, %v49_v9, 0.0 }
  0xa0   :  { %v53_v13 = vrot.slane %v52_v12, 4 }
  0xa1   :  { %v50_v14 = vmul.f32 %v45_v6, %v44_v11 }
  0xa2   :  { %v54_v15 = vadd.f32 %v53_v13, %v52_v12 }
  0xa3   :  { %v59_v16 = vsel %vm51_vm0, %v50_v14, 0.0 }
  0xa4   :  { %v55_v17 = vrot.slane %v54_v15, 2  ;;  %v60_v19 = vrot.slane %v59_v16, 4 }
  0xa6   :  { %v56_v20 = vadd.f32 %v55_v17, %v54_v15  ;;  %v61_v21 = vadd.f32 %v60_v19, %v59_v16 }
  0xa8   :  { %v57_v22 = vrot.slane %v56_v20, 1  ;;  %v62_v24 = vrot.slane %v61_v21, 2 }
  0xaa   :  { %v58_v26 = vadd.f32 %v57_v22, %v56_v20  ;;  %v63_v27 = vadd.f32 %v62_v24, %v61_v21 }
  0xac   :  { %v66_v28 = vadd.f32 %v58_v26, %v46_v25  ;;  %v64_v30 = vrot.slane %v63_v27, 1 }
  0xae   :  { %v68_v31 = vmax.f32 %v66_v28, 0.0  ;;  %v65_v32 = vadd.f32 %v64_v30, %v63_v27 }
  0xb0   :  { %v73_v34 = vrot.slane %v68_v31, %v72_v29  ;;  %v67_v35 = vadd.f32 %v65_v32, %v46_v25 }
  0xb2   :  { %v78_v36 = vmul.f32 %v73_v34, %v47_v33  ;;  %v69_v37 = vmax.f32 %v67_v35, 0.0 }
  0xb4   :  { %v80_v38 = vsel %vm51_vm0, %v78_v36, 0.0  ;;  %v77_v39 = vrot.slane %v69_v37, %v72_v29 }
  0xb5   :  { %81 = vadd.xlane.f32.xlu1 %v80_v38 }
  0xb6   :  { %v79_v40 = vmul.f32 %v77_v39, %v47_v33 }
  0xb8   :  { %v83_v41 = vsel %vm51_vm0, %v79_v40, 0.0 }
  0xb9   :  { %84 = vadd.xlane.f32.xlu1 %v83_v41 }
 0x13e   :  { %v82_v44 = vpop.xlane.xlu1 %81 }
 0x13f   :  { %v86_v45 = vadd.f32 %v82_v44, %v48_v43 }
 0x141   :  { %v135_v46 = vmul.f32 -1.442695, %v86_v45 }
 0x142   :  { %v85_v47 = vpop.xlane.xlu1 %84 }
 0x143   :  { %144 = vpow2.f32 %v135_v46  ;;  %v87_v48 = vadd.f32 %v85_v47, %v48_v43 }
 0x145   :  { %v136_v49 = vmul.f32 -1.442695, %v87_v48 }
 0x147   :  { %146 = vpow2.f32 %v136_v49 }
 0x150   :  { %v145_v50 = vpop.eup %144 }
 0x151   :  { %v94_v51 = vadd.f32 1.0, %v145_v50 }
 0x153   :  { %148 = vrcp.f32 %v94_v51 }
 0x154   :  { %v147_v52 = vpop.eup %146 }
 0x155   :  { %v95_v53 = vadd.f32 1.0, %v147_v52 }
 0x157   :  { %150 = vrcp.f32 %v95_v53 }
 0x160   :  { %v149_v54 = vpop.eup %148 }
 0x161   :  { %102 = vperm.xlu0 %142, %v149_v54  }
 0x164   :  { %v151_v55 = vpop.eup %150 }
 0x165   :  { %107 = vperm.xlu1 %143, %v151_v55  }
 0x1dc   :  { %v103_v56 = vpop.permute.xlu0 %102 }
 0x1dd   :  { %v110_v57 = vmul.f32 %v103_v56, %v237_v0  ;;  %v111_v58 = vmul.f32 %v103_v56, %v242_v1 }
 0x1df   :  { %114 = vst [vmem:[#allocation6] sm:$0xff] %v110_v57  ;;  %115 = vst [vmem:[#allocation6 + $0x8] sm:$0xff] %v111_v58 }
 0x1e0   :  { %v108_v59 = vpop.permute.xlu1 %107 }
 0x1e1   :  { %v112_v60 = vmul.f32 %v108_v59, %v247_v2  ;;  %v113_v61 = vmul.f32 %v108_v59, %v254_v4 }
 0x1e3   :  { %116 = vst [vmem:[#allocation6 + $0x10] sm:$0xff] %v112_v60  ;;  %117 = vst [vmem:[#allocation6 + $0x18] sm:$0xff] %v113_v61 }
 0x1e4   :  { %183 = shalt.err (!%p180_p9)
}
 0x1e5   :  { %s199_s11 = smov 256   ;;  %s200_s12 = smov 16  }
 0x1e6   :  { %129 = dma.vmem_to_hbm [thread:$0]  %s124_s4, 512, %s283_s5, [#allocation5], %s199_s11, %s199_s11, %s200_s12  }
 0x1e7   :  { %194 = dma.done.wait [#allocation5], 512  }
 0x1e8   :  { %195 = vsyncadd [#allocation5], 4294966784 }
 0x1e9   :  { %133 = vsyncpa [#allocation4], 1 }
 0x1ea   :  { %134 = vsyncpa [#allocation5], 1 }

</bundles_post_ra>
